<compile_context>
chip_gen: v7x
topology: tpu7x:2x2x1
jax: 0.10.0
libtpu: 0.0.40
codegen_flags: <defaults>
</compile_context>

<pallas_src>
import functools

import jax
import jax.numpy as jnp
from jax.experimental import pallas as pl
from jax.experimental.pallas import tpu as pltpu


# Double-buffered working-set budget for the pipelined blocks, and the scoped
# VMEM limit handed to Mosaic.  48 MiB < v7x's 64 MiB physical VMEM, and well
# above v5e's 16 MiB / v6e's 32 MiB scoped defaults.
_VMEM_WORKING_SET_BUDGET = 40 * 1024 * 1024
_VMEM_LIMIT_BYTES = 48 * 1024 * 1024


def _round_up(x, m):
    return ((x + m - 1) // m) * m


def _independent_dropout_kernel(*refs, n, p):
    u_refs = refs[:n]          # n x (TB, TS)       uniforms in [0, 1), f32
    x_refs = refs[n:2 * n]     # n x (TB, TS, H_i)  activations (native dtype)
    o_refs = refs[2 * n:]      # n x (TB, TS, H_i)  outputs

    keep_prob = jnp.float32(1.0 - p)
    keeps = [(u_refs[i][...] < keep_prob).astype(jnp.float32) for i in range(n)]

    total = keeps[0]
    for k in keeps[1:]:
        total = total + k
    # max(total, 1) also guards the padded lanes of a partial edge tile.
    scale = jnp.float32(n) / jnp.maximum(total, jnp.float32(1.0))   # (TB, TS)

    for i in range(n):
        # (TB, TS) f32 mask, shared across the hidden dim.  The broadcast to
        # (TB, TS, H) goes through the XLU; it rides a free slot and stays
        # hidden under the DMA for this HBM-bound kernel.
        mask = keeps[i] * scale
        x = x_refs[i][...]
        # Multiply in the input dtype (matches the torch module, where the
        # mask inherits the activation dtype via x.new_empty).
        o_refs[i][...] = x * mask[:, :, None].astype(x.dtype)


def _choose_tiles(B, S, n, items):
    """Pick (TB, TS) so 2 * TB * TS * per_bs ~<= budget, with TS lane-dense."""
    # Bytes streamed per (batch row, seq position): n f32 uniforms in, plus
    # each activation read once and written once.
    per_bs = n * 4 + sum(2 * int(x.shape[2]) * x.dtype.itemsize for x in items)
    budget = _VMEM_WORKING_SET_BUDGET

    if S < 128:
        # Full axis is the only legal non-128-multiple block for the 2-D mask.
        TS = S
    else:
        ts_budget = budget // (2 * B * per_bs)        # seq positions per step
        TS = max(128, (ts_budget // 128) * 128)       # lane-dense mask block
        # Prefer >= 2 sequence tiles so v7x megacore shards across both TCs.
        TS = min(TS, max(128, _round_up((S + 1) // 2, 128)))
        TS = min(TS, _round_up(S, 128))               # never exceed padded S

    TB = B
    # If even a single 128-row tile blows the budget, tile the batch too
    # (sublane-legal blocks only: multiples of 8).
    if 2 * B * TS * per_bs > budget and B % 8 == 0:
        TB = max(8, min(B, (budget // (2 * TS * per_bs)) // 8 * 8))
    # v7x megacore: if S collapses to one tile, split B when legally possible.
    if pl.cdiv(S, TS) == 1 and TB == B and B % 16 == 0:
        TB = B // 2
    return TB, TS


def independent_dropout(items, key=None, *, p=0.5, training=True, uniforms=None,
                        donate_items=False):
    """Pallas implementation of IndependentDropout.forward.

    items:        list of arrays, each (B, S, H_i) with a common (B, S).
    key:          jax PRNG key used to draw the Bernoulli masks (unused if
                  `uniforms` is provided).
    uniforms:     optional list of n arrays of shape (B, S) in [0, 1) — lets a
                  caller / test supply the exact randomness.
    donate_items: set True when the caller donates `items`; the outputs then
                  alias the input HBM buffers (no extra allocation / copies).
    """
    items = list(items)
    if (not training) or p == 0.0 or not items:
        return items

    n = len(items)
    B, S = items[0].shape[:2]
    for x in items:
        if x.ndim != 3 or x.shape[:2] != (B, S):
            raise ValueError("all items must be (B, S, H_i) with a common (B, S)")

    if uniforms is None:
        if key is None:
            raise ValueError("training mode needs `key` or explicit `uniforms`")
        keys = jax.random.split(key, n)
        uniforms = [jax.random.uniform(k, (B, S), dtype=jnp.float32) for k in keys]
    uniforms = [u.astype(jnp.float32) for u in uniforms]

    TB, TS = _choose_tiles(B, S, n, items)
    grid = (pl.cdiv(B, TB), pl.cdiv(S, TS))

    u_specs = [pl.BlockSpec((TB, TS), lambda b, s: (b, s)) for _ in range(n)]
    x_specs = [pl.BlockSpec((TB, TS, int(x.shape[2])), lambda b, s: (b, s, 0))
               for x in items]
    o_specs = [pl.BlockSpec((TB, TS, int(x.shape[2])), lambda b, s: (b, s, 0))
               for x in items]

    hid_elems = sum(B * S * int(x.shape[2]) for x in items)
    bytes_accessed = n * B * S * 4 + sum(
        2 * B * S * int(x.shape[2]) * x.dtype.itemsize for x in items)
    cost = pl.CostEstimate(flops=hid_elems + 3 * n * B * S,
                           transcendentals=0,
                           bytes_accessed=bytes_accessed)

    kernel = functools.partial(_independent_dropout_kernel, n=n, p=float(p))

    # Outputs alias the (donated) inputs: out i <- input n + i.
    aliases = {n + i: i for i in range(n)} if donate_items else {}

    outs = pl.pallas_call(
        kernel,
        out_shape=[jax.ShapeDtypeStruct(x.shape, x.dtype) for x in items],
        grid=grid,
        in_specs=u_specs + x_specs,
        out_specs=o_specs,
        input_output_aliases=aliases,
        cost_estimate=cost,
        compiler_params=pltpu.CompilerParams(
            dimension_semantics=("parallel", "parallel"),   # fully independent tiles
            vmem_limit_bytes=_VMEM_LIMIT_BYTES,
        ),
    )(*uniforms, *items)
    return list(outs)


def _independent_dropout_ref(items, uniforms, p):
    """Pure-JAX reference matching the PyTorch module."""
    n = len(items)
    keeps = [(u < (1.0 - p)).astype(jnp.float32) for u in uniforms]
    total = sum(keeps)
    scale = n / jnp.maximum(total, 1.0)
    return [x * ((k * scale)[..., None]).astype(x.dtype) for x, k in zip(items, keeps)]


if __name__ == "__main__":
    key = jax.random.PRNGKey(0)
    p = 0.5

    # --- Small shapes consistent with the module (batch=2, seq=8, hidden=32/64) ---
    B, S = 2, 8
    k1, k2, ku1, ku2 = jax.random.split(key, 4)
    x1 = jax.random.normal(k1, (B, S, 32), dtype=jnp.float32)
    x2 = jax.random.normal(k2, (B, S, 64), dtype=jnp.float32)
    u1 = jax.random.uniform(ku1, (B, S), dtype=jnp.float32)
    u2 = jax.random.uniform(ku2, (B, S), dtype=jnp.float32)

    outs = independent_dropout([x1, x2], p=p, training=True, uniforms=[u1, u2])
    outs = jax.block_until_ready(outs)

    refs = _independent_dropout_ref([x1, x2], [u1, u2], p)
    for o, r, x in zip(outs, refs, [x1, x2]):
        assert o.shape == x.shape and o.dtype == x.dtype
        assert bool(jnp.allclose(o, r, atol=1e-6)), "mismatch vs reference (small)"

    # Mask is shared across the hidden dim: out/x ratio constant along axis -1.
    ratio = outs[0] / x1
    assert bool(jnp.allclose(ratio, ratio[..., :1], atol=1e-5))

    # --- Larger shapes exercising the tiled + partial-edge-tile path (S=384 -> TS=256,
    #     two sequence tiles, second one partial) and mixed dtypes ---
    Bl, Sl = 2, 384
    k3, k4, ku3, ku4 = jax.random.split(jax.random.PRNGKey(1), 4)
    y1 = jax.random.normal(k3, (Bl, Sl, 256), dtype=jnp.float32)
    y2 = jax.random.normal(k4, (Bl, Sl, 160), dtype=jnp.bfloat16)
    v1 = jax.random.uniform(ku3, (Bl, Sl), dtype=jnp.float32)
    v2 = jax.random.uniform(ku4, (Bl, Sl), dtype=jnp.float32)

    outs_l = independent_dropout([y1, y2], p=p, training=True, uniforms=[v1, v2])
    outs_l = jax.block_until_ready(outs_l)
    refs_l = _independent_dropout_ref([y1, y2], [v1, v2], p)
    assert bool(jnp.allclose(outs_l[0], refs_l[0], atol=1e-6)), "mismatch (tiled f32)"
    assert bool(jnp.allclose(outs_l[1].astype(jnp.float32),
                             refs_l[1].astype(jnp.float32),
                             rtol=2e-2, atol=1e-2)), "mismatch (tiled bf16)"

    # Eval mode is identity (returns the inputs untouched).
    outs_eval = independent_dropout([x1, x2], key=key, p=p, training=False)
    assert all(bool(jnp.array_equal(o, x)) for o, x in zip(outs_eval, [x1, x2]))

    print("KERNEL_OK")
</pallas_src>

<mosaic_0001>
module attributes {stable_mosaic.version = 11 : i64} {
  func.func @_independent_dropout_kernel(%arg0: i32, %arg1: i32, %arg2: memref<2x8xf32, #tpu.memory_space<vmem>>, %arg3: memref<2x8xf32, #tpu.memory_space<vmem>>, %arg4: memref<2x8x32xf32, #tpu.memory_space<vmem>>, %arg5: memref<2x8x64xf32, #tpu.memory_space<vmem>>, %arg6: memref<2x8x32xf32, #tpu.memory_space<vmem>>, %arg7: memref<2x8x64xf32, #tpu.memory_space<vmem>>) attributes {dimension_semantics = [#tpu.dimension_semantics<parallel>, #tpu.dimension_semantics<parallel>], iteration_bounds = array<i64: 1, 1>, scalar_prefetch = 0 : i64, scratch_operands = 0 : i64, tpu.core_type = #tpu.core_type<tc>, window_params = [{transform_indices = @transform_0, window_bounds = array<i64: 2, 8>}, {transform_indices = @transform_1, window_bounds = array<i64: 2, 8>}, {transform_indices = @transform_2, window_bounds = array<i64: 2, 8, 32>}, {transform_indices = @transform_3, window_bounds = array<i64: 2, 8, 64>}, {transform_indices = @transform_4, window_bounds = array<i64: 2, 8, 32>}, {transform_indices = @transform_5, window_bounds = array<i64: 2, 8, 64>}]} {
    %c0 = arith.constant 0 : index
    %c0_0 = arith.constant 0 : index
    %0 = vector.load %arg2[%c0, %c0_0] : memref<2x8xf32, #tpu.memory_space<vmem>>, vector<2x8xf32>
    %cst = arith.constant 5.000000e-01 : f32
    %1 = vector.broadcast %cst : f32 to vector<2x8xf32>
    %2 = arith.cmpf olt, %0, %1 : vector<2x8xf32>
    %3 = arith.extui %2 : vector<2x8xi1> to vector<2x8xi32>
    %4 = arith.sitofp %3 : vector<2x8xi32> to vector<2x8xf32>
    %c0_1 = arith.constant 0 : index
    %c0_2 = arith.constant 0 : index
    %5 = vector.load %arg3[%c0_1, %c0_2] : memref<2x8xf32, #tpu.memory_space<vmem>>, vector<2x8xf32>
    %cst_3 = arith.constant 5.000000e-01 : f32
    %6 = vector.broadcast %cst_3 : f32 to vector<2x8xf32>
    %7 = arith.cmpf olt, %5, %6 : vector<2x8xf32>
    %8 = arith.extui %7 : vector<2x8xi1> to vector<2x8xi32>
    %9 = arith.sitofp %8 : vector<2x8xi32> to vector<2x8xf32>
    %10 = arith.addf %4, %9 : vector<2x8xf32>
    %cst_4 = arith.constant 1.000000e+00 : f32
    %11 = vector.broadcast %cst_4 : f32 to vector<2x8xf32>
    %12 = arith.maximumf %10, %11 : vector<2x8xf32>
    %cst_5 = arith.constant 2.000000e+00 : f32
    %13 = vector.broadcast %cst_5 : f32 to vector<2x8xf32>
    %14 = arith.divf %13, %12 : vector<2x8xf32>
    %15 = arith.mulf %4, %14 : vector<2x8xf32>
    %c0_6 = arith.constant 0 : index
    %c0_7 = arith.constant 0 : index
    %c0_8 = arith.constant 0 : index
    %16 = vector.load %arg4[%c0_6, %c0_7, %c0_8] : memref<2x8x32xf32, #tpu.memory_space<vmem>>, vector<2x8x32xf32>
    %17 = vector.shape_cast %15 : vector<2x8xf32> to vector<2x8x1xf32>
    %18 = vector.broadcast %17 : vector<2x8x1xf32> to vector<2x8x32xf32>
    %19 = arith.mulf %16, %18 : vector<2x8x32xf32>
    %c0_9 = arith.constant 0 : index
    %c0_10 = arith.constant 0 : index
    %c0_11 = arith.constant 0 : index
    %20 = vector.load %arg6[%c0_9, %c0_10, %c0_11] : memref<2x8x32xf32, #tpu.memory_space<vmem>>, vector<2x8x32xf32>
    tpu.vector_store %arg6[%c0_9, %c0_10, %c0_11], %19 {strides = array<i32>} : memref<2x8x32xf32, #tpu.memory_space<vmem>>, vector<2x8x32xf32>,
    %21 = arith.mulf %9, %14 : vector<2x8xf32>
    %c0_12 = arith.constant 0 : index
    %c0_13 = arith.constant 0 : index
    %c0_14 = arith.constant 0 : index
    %22 = vector.load %arg5[%c0_12, %c0_13, %c0_14] : memref<2x8x64xf32, #tpu.memory_space<vmem>>, vector<2x8x64xf32>
    %23 = vector.shape_cast %21 : vector<2x8xf32> to vector<2x8x1xf32>
    %24 = vector.broadcast %23 : vector<2x8x1xf32> to vector<2x8x64xf32>
    %25 = arith.mulf %22, %24 : vector<2x8x64xf32>
    %c0_15 = arith.constant 0 : index
    %c0_16 = arith.constant 0 : index
    %c0_17 = arith.constant 0 : index
    %26 = vector.load %arg7[%c0_15, %c0_16, %c0_17] : memref<2x8x64xf32, #tpu.memory_space<vmem>>, vector<2x8x64xf32>
    tpu.vector_store %arg7[%c0_15, %c0_16, %c0_17], %25 {strides = array<i32>} : memref<2x8x64xf32, #tpu.memory_space<vmem>>, vector<2x8x64xf32>,
    return
  }
  func.func @transform_0(%arg0: i32, %arg1: i32) -> (i32, i32) {
    %c0_i32 = arith.constant 0 : i32
    return %arg0, %arg1 : i32, i32
  }
  func.func @transform_1(%arg0: i32, %arg1: i32) -> (i32, i32) {
    %c0_i32 = arith.constant 0 : i32
    return %arg0, %arg1 : i32, i32
  }
  func.func @transform_2(%arg0: i32, %arg1: i32) -> (i32, i32, i32) {
    %c0_i32 = arith.constant 0 : i32
    %c0_i32_0 = arith.constant 0 : i32
    return %arg0, %arg1, %c0_i32 : i32, i32, i32
  }
  func.func @transform_3(%arg0: i32, %arg1: i32) -> (i32, i32, i32) {
    %c0_i32 = arith.constant 0 : i32
    %c0_i32_0 = arith.constant 0 : i32
    return %arg0, %arg1, %c0_i32 : i32, i32, i32
  }
  func.func @transform_4(%arg0: i32, %arg1: i32) -> (i32, i32, i32) {
    %c0_i32 = arith.constant 0 : i32
    %c0_i32_0 = arith.constant 0 : i32
    return %arg0, %arg1, %c0_i32 : i32, i32, i32
  }
  func.func @transform_5(%arg0: i32, %arg1: i32) -> (i32, i32, i32) {
    %c0_i32 = arith.constant 0 : i32
    %c0_i32_0 = arith.constant 0 : i32
    return %arg0, %arg1, %c0_i32 : i32, i32, i32
  }
}

</mosaic_0001>

<bundles_post_ra>
// kernel: tpu_custom_call.1
= control target key start
LH: loop header
LB: loop body
LE: loop exit
PB: predicated region body
PF: predicated region fallthrough
CT: control target
= control target key end

     0   :  { %11 = vsyncpa [#allocation3], 0  ;;  %s404_s0 = inlined_call_operand.hbm [shape: f32[2,8], index: 0, kind: input, shape index: {}]   ;;  %s405_s1 = inlined_call_operand.vmem [shape: f32[2,8], index: 1, kind: input, shape index: {}]   ;;  %s406_s2 = inlined_call_operand.hbm [shape: f32[2,8,32], index: 2, kind: input, shape index: {}]   ;;  %s407_s3 = inlined_call_operand.hbm [shape: f32[2,8,64], index: 3, kind: input, shape index: {}]   ;;  %s408_s4 = inlined_call_operand.hbm [shape: f32[2,8,32], index: 4, kind: output, shape index: {0}]   ;;  %s409_s5 = inlined_call_operand.hbm [shape: f32[2,8,64], index: 5, kind: output, shape index: {1}]  }
   0x1   :  { %12 = vsyncpa [#allocation6], 0 }
   0x2   :  { %13 = vsyncpa [#allocation4], 0 }
   0x3   :  { %14 = vsyncpa [#allocation10], 0  ;;  %s280_s18 = smov [#allocation5]   ;;  %s162_s22 = scalar_lea.hbm %s406_s2, 256 }
   0x4   :  { %s32_s19 = sshll.u32 %s280_s18, 4  ;;  %p163_p0 = scmp.ne.s32.totalorder %s406_s2, %s162_s22  ;;  %s33_s19 = int_to_ptr.vmem [resolvable:$true] %s32_s19 }
   0x5   :  { %p166_p1 = scmp.lt.u32.totalorder %s162_s22, %s406_s2 }
   0x7   :  { %p168_p2 = pnand %p166_p1, %p163_p0 }
   0x9   :  { %171 = shalt.err (!%p168_p2)
}
   0xa   :  { %s172_s27 = scalar_lea.vmem %s33_s19, 256  ;;  %p177_p4 = scmp.lt.s32.totalorder %s33_s19, %s33_s19 }
   0xb   :  { %p173_p3 = scmp.ne.s32.totalorder %s33_s19, %s172_s27  ;;  %p178_p5 = scmp.lt.s32.totalorder %s172_s27, %s172_s27 }
   0xd   :  { %p179_p6 = por %p178_p5, %p177_p4 }
   0xf   :  { %p180_p7 = pnand %p179_p6, %p173_p3 }
  0x11   :  { %183 = shalt.err (!%p180_p7)
}
  0x12   :  { %s281_s28 = smov 128   ;;  %s282_s29 = smov 8  }
  0x13   :  { %38 = dma.hbm_to_vmem [thread:$0]  %s406_s2, 256, %s33_s19, [#allocation6], %s281_s28, %s281_s28, %s282_s29  }
  0x14   :  { %s283_s7 = smov [#allocation2]   ;;  %s284_s9 = smov [#allocation7]  }
  0x15   :  { %s21_s8 = sshll.u32 %s283_s7, 4  ;;  %s44_s10 = sshll.u32 %s284_s9, 4  ;;  %s22_s8 = int_to_ptr.vmem [resolvable:$true] %s21_s8  ;;  %s45_s10 = int_to_ptr.vmem [resolvable:$true] %s44_s10 }
  0x16   :  { %s184_s13 = scalar_lea.hbm %s404_s0, 32 }
  0x17   :  { %p185_p8 = scmp.ne.s32.totalorder %s404_s0, %s184_s13  ;;  %p188_p9 = scmp.lt.u32.totalorder %s184_s13, %s404_s0 }
  0x19   :  { %p190_p10 = pnand %p188_p9, %p185_p8 }
  0x1b   :  { %193 = shalt.err (!%p190_p10)
}
  0x1c   :  { %s194_s2 = scalar_lea.vmem %s22_s8, 32  ;;  %p199_p12 = scmp.lt.s32.totalorder %s22_s8, %s22_s8 }
  0x1d   :  { %p195_p11 = scmp.ne.s32.totalorder %s22_s8, %s194_s2  ;;  %p200_p13 = scmp.lt.s32.totalorder %s194_s2, %s194_s2 }
  0x1f   :  { %p201_p0 = por %p200_p13, %p199_p12 }
  0x21   :  { %p202_p1 = pnand %p201_p0, %p195_p11 }
  0x23   :  { %205 = shalt.err (!%p202_p1)
}
  0x24   :  { %24 = dma.hbm_to_vmem [thread:$0]  %s404_s0, 32, %s22_s8, [#allocation3]  }
  0x25   :  { %s206_s22 = scalar_lea.hbm %s407_s3, 256 }
  0x26   :  { %p207_p2 = scmp.ne.s32.totalorder %s407_s3, %s206_s22  ;;  %p210_p3 = scmp.lt.u32.totalorder %s206_s22, %s407_s3 }
  0x28   :  { %p212_p4 = pnand %p210_p3, %p207_p2 }
  0x2a   :  { %215 = shalt.err (!%p212_p4)
}
  0x2b   :  { %s216_s27 = scalar_lea.vmem %s45_s10, 256  ;;  %p221_p6 = scmp.lt.s32.totalorder %s45_s10, %s45_s10 }
  0x2c   :  { %p217_p5 = scmp.ne.s32.totalorder %s45_s10, %s216_s27  ;;  %p222_p7 = scmp.lt.s32.totalorder %s216_s27, %s216_s27 }
  0x2e   :  { %p223_p8 = por %p222_p7, %p221_p6 }
  0x30   :  { %p224_p9 = pnand %p223_p8, %p217_p5 }
  0x32   :  { %227 = shalt.err (!%p224_p9)
}
  0x33   :  { %50 = dma.hbm_to_vmem [thread:$0]  %s407_s3, 256, %s45_s10, [#allocation6], %s281_s28, %s281_s28, %s282_s29  }
  0x34   :  { %272 = dma.done.wait [#allocation3], 32  }
  0x35   :  { %273 = vsyncadd [#allocation3], 4294967264 }
  0x36   :  { %274 = dma.done.wait [#allocation6], 512  }
  0x37   :  { %275 = vsyncadd [#allocation6], 4294966784  ;;  %v60_v0 = vld [vmem:[#allocation2] sm:$0x3]  ;;  %v285_v2 = vmov 0.0   ;;  %v75_v7 = vlaneseq  ;;  %v95_v19 = vld [vmem:[#allocation7] sm:$0xff] }
  0x38   :  { %v64_v1 = vld [vmem:[%s405_s1] sm:$0x3]  ;;  %vm61_vm0 = vcmp.lt.f32.partialorder %v60_v0, 0.5  ;;  %v73_v20 = vld [vmem:[#allocation5] sm:$0xff]  ;;  %vm91_vm2 = vcmask 261120   ;;  %vm113_vm3 = vcmask 523264  }
  0x39   :  { %vm65_vm1 = vcmp.lt.f32.partialorder %v64_v1, 0.5  ;;  %v150_v3 = vsel %vm61_vm0, 1.0, %v285_v2  ;;  %v76_v8 = vshrl.u32 %v75_v7, 7  ;;  %v96_v25 = vld [vmem:[#allocation7 + $0x8] sm:$0xff]  ;;  %v74_v26 = vld [vmem:[#allocation5 + $0x8] sm:$0xff]  ;;  %s286_s1 = smov [#allocation8]  }
  0x3a   :  { %v151_v4 = vsel %vm65_vm1, 1.0, %v285_v2  ;;  %s121_s3 = sshll.u32 %s286_s1, 4  ;;  %s287_s8 = smov [#allocation9]   ;;  %s122_s3 = int_to_ptr.vmem [resolvable:$true] %s121_s3 }
  0x3b   :  { %v68_v5 = vadd.f32 %v151_v4, %v150_v3  ;;  %v77_v11 = vsub.s32 0, %v76_v8  ;;  %v84_v14 = vsub.s32 1, %v76_v8  ;;  %s133_s9 = sshll.u32 %s287_s8, 4  ;;  %s228_s10 = scalar_lea.vmem %s122_s3, 256  ;;  %s365_s9 = int_to_ptr.vmem [resolvable:$true] %s133_s9 }
  0x3c   :  { %p229_p10 = scmp.ne.s32.totalorder %s122_s3, %s228_s10  ;;  %p233_p11 = scmp.lt.s32.totalorder %s122_s3, %s122_s3 }
  0x3d   :  { %v69_v6 = vmax.f32 %v68_v5, 1.0  ;;  %p234_p12 = scmp.lt.s32.totalorder %s228_s10, %s228_s10 }
  0x3f   :  { %160 = vrcp.f32 %v69_v6  ;;  %p235_p13 = por %p234_p12, %p233_p11 }
  0x41   :  { %p236_p0 = pnand %p235_p13, %p229_p10 }
  0x49   :  { %v161_v9 = vpop.eup %160 }
  0x4a   :  { %v71_v10 = vmul.f32 2.0, %v161_v9 }
  0x4c   :  { %v94_v12 = vmul.f32 %v151_v4, %v71_v10  ;;  %v72_v13 = vmul.f32 %v150_v3, %v71_v10 }
  0x4e   :  { %v100_v15 = vrot.slane %v94_v12, %v77_v11  ;;  %v78_v16 = vrot.slane %v72_v13, %v77_v11  ;;  %v107_v17 = vrot.slane %v94_v12, %v84_v14  ;;  %v85_v18 = vrot.slane %v72_v13, %v84_v14 }
  0x50   :  { %102 = vbcast.lane.b32.xlu1 %v100_v15, 256  ;;  %80 = vbcast.lane.b32.xlu0 %v78_v16, 256 }
  0x54   :  { %109 = vbcast.lane.b32.xlu1 %v107_v17, 256  ;;  %87 = vbcast.lane.b32.xlu0 %v85_v18, 256 }
  0xc2   :  { %v103_v21 = vpop.permute.xlu1 %102  ;;  %v81_v22 = vpop.permute.xlu0 %80 }
  0xc3   :  { %v111_v23 = vmul.f32 %v103_v21, %v95_v19  ;;  %v89_v24 = vmul.f32 %v81_v22, %v73_v20 }
  0xc5   :  { %92 = vst.msk [vmem:[#allocation8] sm:$0xff] %vm91_vm2, %v89_v24 }
  0xc6   :  { %114 = vst.msk [vmem:[#allocation9] sm:$0xff] %vm113_vm3, %v111_v23  ;;  %v110_v27 = vpop.permute.xlu1 %109  ;;  %v88_v28 = vpop.permute.xlu0 %87 }
  0xc7   :  { %v112_v29 = vmul.f32 %v110_v27, %v96_v25  ;;  %v90_v30 = vmul.f32 %v88_v28, %v74_v26 }
  0xc9   :  { %93 = vst.msk [vmem:[#allocation8 + $0x8] sm:$0xff] %vm91_vm2, %v90_v30 }
  0xca   :  { %115 = vst.msk [vmem:[#allocation9 + $0x8] sm:$0xff] %vm113_vm3, %v112_v29 }
  0xcb   :  { %239 = shalt.err (!%p236_p0)
}
  0xcc   :  { %s240_s13 = scalar_lea.hbm %s408_s4, 256 }
  0xcd   :  { %p241_p1 = scmp.ne.s32.totalorder %s408_s4, %s240_s13  ;;  %p244_p2 = scmp.lt.u32.totalorder %s240_s13, %s408_s4 }
  0xcf   :  { %p246_p3 = pnand %p244_p2, %p241_p1 }
  0xd1   :  { %249 = shalt.err (!%p246_p3)
}
  0xd2   :  { %127 = dma.vmem_to_hbm [thread:$0]  %s122_s3, 256, %s408_s4, [#allocation4], %s281_s28, %s281_s28, %s282_s29  }
  0xd3   :  { %s250_s19 = scalar_lea.vmem %s365_s9, 256  ;;  %p255_p5 = scmp.lt.s32.totalorder %s365_s9, %s365_s9 }
  0xd4   :  { %p251_p4 = scmp.ne.s32.totalorder %s365_s9, %s250_s19  ;;  %p256_p6 = scmp.lt.s32.totalorder %s250_s19, %s250_s19 }
  0xd6   :  { %p257_p7 = por %p256_p6, %p255_p5 }
  0xd8   :  { %p258_p8 = pnand %p257_p7, %p251_p4 }
  0xda   :  { %261 = shalt.err (!%p258_p8)
}
  0xdb   :  { %s262_s22 = scalar_lea.hbm %s409_s5, 256 }
  0xdc   :  { %p263_p9 = scmp.ne.s32.totalorder %s409_s5, %s262_s22  ;;  %p266_p10 = scmp.lt.u32.totalorder %s262_s22, %s409_s5 }
  0xde   :  { %p268_p11 = pnand %p266_p10, %p263_p9 }
  0xe0   :  { %271 = shalt.err (!%p268_p11)
}
  0xe1   :  { %139 = dma.vmem_to_hbm [thread:$0]  %s365_s9, 256, %s409_s5, [#allocation10], %s281_s28, %s281_s28, %s282_s29  }
  0xe2   :  { %276 = dma.done.wait [#allocation4], 256  }
  0xe3   :  { %277 = vsyncadd [#allocation4], 4294967040 }
  0xe4   :  { %278 = dma.done.wait [#allocation10], 256  }
  0xe5   :  { %279 = vsyncadd [#allocation10], 4294967040 }
  0xe6   :  { %146 = vsyncpa [#allocation3], 1 }
  0xe7   :  { %147 = vsyncpa [#allocation6], 1 }
  0xe8   :  { %148 = vsyncpa [#allocation4], 1 }
  0xe9   :  { %149 = vsyncpa [#allocation10], 1 }

</bundles_post_ra>
